<compile_context>
chip_gen: v6e
topology: v6e:2x2x1
jax: 0.10.0
libtpu: 0.0.40
codegen_flags: <defaults>
</compile_context>

<pallas_src>
import jax
import jax.numpy as jnp
from jax.experimental import pallas as pl
from jax.experimental.pallas import tpu as pltpu


# --------------------------------------------------------------------------- kernel

def _ae_kernel(xT_ref,
               w1_ref, sh1_ref,
               w2_ref, sh2_ref,
               w3_ref, sh3_ref,
               w4_ref, b4_ref,
               encT_ref, decT_ref):
    f32 = jnp.float32
    bf16 = jnp.bfloat16

    x = xT_ref[...]  # [input_dim, TILE_B], bf16, batch on lanes

    # ---- encoder ----
    # Linear + (folded) BatchNorm + ReLU          (Dropout = identity in eval)
    h1 = jnp.dot(w1_ref[...], x, preferred_element_type=f32) + sh1_ref[...]
    h1 = jnp.maximum(h1, 0.0)                                     # [hid, TILE_B] f32

    # Linear + (folded) BatchNorm  -> encoding
    enc = jnp.dot(w2_ref[...], h1.astype(bf16),
                  preferred_element_type=f32) + sh2_ref[...]      # [enc, TILE_B] f32
    encT_ref[...] = enc.astype(encT_ref.dtype)

    # ---- decoder ----
    # Linear + (folded) BatchNorm + ReLU          (Dropout = identity in eval)
    h2 = jnp.dot(w3_ref[...], enc.astype(bf16),
                 preferred_element_type=f32) + sh3_ref[...]
    h2 = jnp.maximum(h2, 0.0)                                     # [hid, TILE_B] f32

    # Linear + ReLU
    dec = jnp.dot(w4_ref[...], h2.astype(bf16),
                  preferred_element_type=f32) + b4_ref[...]
    dec = jnp.maximum(dec, 0.0)                                    # [input_dim, TILE_B] f32
    decT_ref[...] = dec.astype(decT_ref.dtype)


# --------------------------------------------------------------------------- wrapper

def _choose_tile_b(B, max_tile=1024):
    """Largest batch tile: full B when small, otherwise a multiple of 128 (lane
    width) capped so double-buffered tiles stay well inside every generation's
    VMEM (v7x: 64 MiB physical).  Sweep max_tile per generation for peak BW."""
    if B <= max_tile:
        return B
    return max(128, (max_tile // 128) * 128)


def text_embedding_autoencoder(x, params, *, tile_b=None):
    """Fused autoencoder forward.  x: [B, input_dim] float32 -> (enc, dec)."""
    B, input_dim = x.shape
    hid, in_dim_w = params["w1t"].shape
    assert in_dim_w == input_dim
    enc_dim = params["w2t"].shape[0]

    if tile_b is None:
        tile_b = _choose_tile_b(B)

    # Zero-pad the batch so every grid step handles a full, lane-dense tile.
    num_tiles = pl.cdiv(B, tile_b)
    B_pad = num_tiles * tile_b
    grid = (num_tiles,)

    # Batch-on-lanes layout (layout plumbing only, done once outside the kernel).
    xT = x.astype(jnp.bfloat16).T                   # [input_dim, B]
    if B_pad != B:
        xT = jnp.pad(xT, ((0, 0), (0, B_pad - B)))

    # Batch tiles sweep the grid; weights / shifts are grid-invariant (resident).
    def _const(shape):
        return pl.BlockSpec(shape, lambda i: (0, 0))

    in_specs = [
        pl.BlockSpec((input_dim, tile_b), lambda i: (0, i)),   # xT tile
        _const((hid, input_dim)), _const((hid, 1)),            # w1t, sh1
        _const((enc_dim, hid)),   _const((enc_dim, 1)),        # w2t, sh2
        _const((hid, enc_dim)),   _const((hid, 1)),            # w3t, sh3
        _const((input_dim, hid)), _const((input_dim, 1)),      # w4t, b4
    ]
    out_specs = (
        pl.BlockSpec((enc_dim, tile_b), lambda i: (0, i)),
        pl.BlockSpec((input_dim, tile_b), lambda i: (0, i)),
    )

    # Advisory cost estimate for the XLA scheduler.
    mm = input_dim * hid + hid * enc_dim + enc_dim * hid + hid * input_dim
    cost = pl.CostEstimate(
        flops=2 * B_pad * mm,
        transcendentals=0,
        bytes_accessed=(B_pad * input_dim * 2           # x (bf16 in)
                        + B_pad * enc_dim * 4           # enc (f32 out)
                        + B_pad * input_dim * 4         # dec (f32 out)
                        + 2 * mm                        # bf16 weights
                        + 4 * (hid + enc_dim + hid + input_dim)),  # f32 shifts
    )

    encT, decT = pl.pallas_call(
        _ae_kernel,
        out_shape=(
            jax.ShapeDtypeStruct((enc_dim, B_pad), jnp.float32),
            jax.ShapeDtypeStruct((input_dim, B_pad), jnp.float32),
        ),
        grid=grid,
        in_specs=in_specs,
        out_specs=out_specs,
        compiler_params=pltpu.CompilerParams(
            dimension_semantics=("parallel",),        # shards tiles across v7x cores
            vmem_limit_bytes=48 * 1024 * 1024,        # < 64 MiB (v7x physical)
        ),
        cost_estimate=cost,
    )(xT,
      params["w1t"], params["sh1"],
      params["w2t"], params["sh2"],
      params["w3t"], params["sh3"],
      params["w4t"], params["b4"])

    enc = encT.T[:B]   # [B, enc_dim]
    dec = decT.T[:B]   # [B, input_dim]
    return enc, dec


# --------------------------------------------------------------------- param helpers

def init_raw_params(key, input_dim, encoding_dim):
    """Random module parameters (distinct PRNG keys for every tensor)."""
    hid = 2 * encoding_dim
    keys = iter(jax.random.split(key, 24))

    def lin(fan_in, fan_out):
        bound = 1.0 / jnp.sqrt(jnp.float32(fan_in))
        w = jax.random.uniform(next(keys), (fan_in, fan_out), jnp.float32, -bound, bound)
        b = jax.random.uniform(next(keys), (fan_out,), jnp.float32, -bound, bound)
        return w, b

    def bn(feat):
        g = jax.random.uniform(next(keys), (feat,), jnp.float32, 0.5, 1.5)
        b = jax.random.uniform(next(keys), (feat,), jnp.float32, -0.5, 0.5)
        m = jax.random.uniform(next(keys), (feat,), jnp.float32, -0.5, 0.5)
        v = jax.random.uniform(next(keys), (feat,), jnp.float32, 0.5, 1.5)
        return g, b, m, v

    w1, b1 = lin(input_dim, hid)
    g1, be1, m1, v1 = bn(hid)
    w2, b2 = lin(hid, encoding_dim)
    g2, be2, m2, v2 = bn(encoding_dim)
    w3, b3 = lin(encoding_dim, hid)
    g3, be3, m3, v3 = bn(hid)
    w4, b4 = lin(hid, input_dim)

    return dict(w1=w1, b1=b1, bn1=(g1, be1, m1, v1),
                w2=w2, b2=b2, bn2=(g2, be2, m2, v2),
                w3=w3, b3=b3, bn3=(g3, be3, m3, v3),
                w4=w4, b4=b4)


def prepare_params(raw, eps=1e-5):
    """Fold eval-mode BN into weights/shift, transpose to [out,in], cast to bf16."""
    def fold(w, b, bn):
        g, beta, mean, var = bn
        scale = g / jnp.sqrt(var + eps)
        shift = beta - mean * scale
        w_f = w * scale[None, :]          # fold scale into weight columns
        s_f = scale * b + shift           # fold scale into the bias as well
        return w_f, s_f

    w1, s1 = fold(raw["w1"], raw["b1"], raw["bn1"])
    w2, s2 = fold(raw["w2"], raw["b2"], raw["bn2"])
    w3, s3 = fold(raw["w3"], raw["b3"], raw["bn3"])
    w4, b4 = raw["w4"], raw["b4"]

    bf16, f32 = jnp.bfloat16, jnp.float32
    return dict(
        w1t=w1.T.astype(bf16), sh1=s1[:, None].astype(f32),
        w2t=w2.T.astype(bf16), sh2=s2[:, None].astype(f32),
        w3t=w3.T.astype(bf16), sh3=s3[:, None].astype(f32),
        w4t=w4.T.astype(bf16), b4=b4[:, None].astype(f32),
    )


def _reference(x, kp):
    """Pure-JAX reference of the same eval-mode forward with the same (folded,
    bf16-operand / f32-accumulate) numerics as the kernel."""
    f32, bf16 = jnp.float32, jnp.bfloat16
    xt = x.astype(bf16).T
    h1 = jnp.maximum(jnp.dot(kp["w1t"], xt, preferred_element_type=f32) + kp["sh1"], 0.0)
    enc = jnp.dot(kp["w2t"], h1.astype(bf16), preferred_element_type=f32) + kp["sh2"]
    h2 = jnp.maximum(jnp.dot(kp["w3t"], enc.astype(bf16), preferred_element_type=f32) + kp["sh3"], 0.0)
    dec = jnp.maximum(jnp.dot(kp["w4t"], h2.astype(bf16), preferred_element_type=f32) + kp["b4"], 0.0)
    return enc.T, dec.T


# --------------------------------------------------------------------------- main

if __name__ == "__main__":
    INPUT_DIM = 32
    ENCODING_DIM = 16
    BATCH = 256          # small but exercises a 2-step batch grid with 128-lane tiles

    key = jax.random.PRNGKey(0)
    kx, kparam = jax.random.split(key)
    x = jax.random.normal(kx, (BATCH, INPUT_DIM), jnp.float32)

    raw = init_raw_params(kparam, INPUT_DIM, ENCODING_DIM)
    kparams = prepare_params(raw)

    fwd = jax.jit(lambda xx, pp: text_embedding_autoencoder(xx, pp, tile_b=128))
    enc, dec = fwd(x, kparams)
    jax.block_until_ready((enc, dec))

    enc_ref, dec_ref = _reference(x, kparams)
    assert enc.shape == (BATCH, ENCODING_DIM)
    assert dec.shape == (BATCH, INPUT_DIM)
    assert jnp.allclose(enc, enc_ref, atol=2e-3, rtol=2e-3)
    assert jnp.allclose(dec, dec_ref, atol=2e-3, rtol=2e-3)

    print("KERNEL_OK")
</pallas_src>

<mosaic_0001>
module attributes {stable_mosaic.version = 11 : i64} {
  func.func @_ae_kernel(%arg0: i32, %arg1: memref<32x128xbf16, #tpu.memory_space<vmem>>, %arg2: memref<32x32xbf16, #tpu.memory_space<vmem>>, %arg3: memref<32x1xf32, #tpu.memory_space<vmem>>, %arg4: memref<16x32xbf16, #tpu.memory_space<vmem>>, %arg5: memref<16x1xf32, #tpu.memory_space<vmem>>, %arg6: memref<32x16xbf16, #tpu.memory_space<vmem>>, %arg7: memref<32x1xf32, #tpu.memory_space<vmem>>, %arg8: memref<32x32xbf16, #tpu.memory_space<vmem>>, %arg9: memref<32x1xf32, #tpu.memory_space<vmem>>, %arg10: memref<16x128xf32, #tpu.memory_space<vmem>>, %arg11: memref<32x128xf32, #tpu.memory_space<vmem>>) attributes {dimension_semantics = [#tpu.dimension_semantics<parallel>], iteration_bounds = array<i64: 2>, scalar_prefetch = 0 : i64, scratch_operands = 0 : i64, tpu.core_type = #tpu.core_type<tc>, window_params = [{transform_indices = @transform_0, window_bounds = array<i64: 32, 128>}, {pipeline_mode = #tpu.pipeline_mode<synchronous>, transform_indices = @transform_1, window_bounds = array<i64: 32, 32>}, {pipeline_mode = #tpu.pipeline_mode<synchronous>, transform_indices = @transform_2, window_bounds = array<i64: 32, 1>}, {pipeline_mode = #tpu.pipeline_mode<synchronous>, transform_indices = @transform_3, window_bounds = array<i64: 16, 32>}, {pipeline_mode = #tpu.pipeline_mode<synchronous>, transform_indices = @transform_4, window_bounds = array<i64: 16, 1>}, {pipeline_mode = #tpu.pipeline_mode<synchronous>, transform_indices = @transform_5, window_bounds = array<i64: 32, 16>}, {pipeline_mode = #tpu.pipeline_mode<synchronous>, transform_indices = @transform_6, window_bounds = array<i64: 32, 1>}, {pipeline_mode = #tpu.pipeline_mode<synchronous>, transform_indices = @transform_7, window_bounds = array<i64: 32, 32>}, {pipeline_mode = #tpu.pipeline_mode<synchronous>, transform_indices = @transform_8, window_bounds = array<i64: 32, 1>}, {transform_indices = @transform_9, window_bounds = array<i64: 16, 128>}, {transform_indices = @transform_10, window_bounds = array<i64: 32, 128>}]} {
    %c0 = arith.constant 0 : index
    %c0_0 = arith.constant 0 : index
    %0 = vector.load %arg1[%c0, %c0_0] : memref<32x128xbf16, #tpu.memory_space<vmem>>, vector<32x128xbf16>
    %c0_1 = arith.constant 0 : index
    %c0_2 = arith.constant 0 : index
    %1 = vector.load %arg2[%c0_1, %c0_2] : memref<32x32xbf16, #tpu.memory_space<vmem>>, vector<32x32xbf16>
    %cst = arith.constant dense<0.000000e+00> : vector<32x128xf32>
    %2 = tpu.matmul %1, %0, %cst {dimension_numbers = #tpu.dot_dimension_numbers<[1], [0], [0], [1], [0, 0, 1, 1], [], []>} : vector<32x32xbf16>, vector<32x128xbf16>, vector<32x128xf32> -> vector<32x128xf32>
    %c0_3 = arith.constant 0 : index
    %c0_4 = arith.constant 0 : index
    %3 = vector.load %arg3[%c0_3, %c0_4] : memref<32x1xf32, #tpu.memory_space<vmem>>, vector<32x1xf32>
    %4 = vector.broadcast %3 : vector<32x1xf32> to vector<32x128xf32>
    %5 = arith.addf %2, %4 : vector<32x128xf32>
    %cst_5 = arith.constant 0.000000e+00 : f32
    %6 = vector.broadcast %cst_5 : f32 to vector<32x128xf32>
    %7 = arith.maximumf %5, %6 : vector<32x128xf32>
    %c0_6 = arith.constant 0 : index
    %c0_7 = arith.constant 0 : index
    %8 = vector.load %arg4[%c0_6, %c0_7] : memref<16x32xbf16, #tpu.memory_space<vmem>>, vector<16x32xbf16>
    %9 = arith.truncf %7 : vector<32x128xf32> to vector<32x128xbf16>
    %cst_8 = arith.constant dense<0.000000e+00> : vector<16x128xf32>
    %10 = tpu.matmul %8, %9, %cst_8 {dimension_numbers = #tpu.dot_dimension_numbers<[1], [0], [0], [1], [0, 0, 1, 1], [], []>} : vector<16x32xbf16>, vector<32x128xbf16>, vector<16x128xf32> -> vector<16x128xf32>
    %c0_9 = arith.constant 0 : index
    %c0_10 = arith.constant 0 : index
    %11 = vector.load %arg5[%c0_9, %c0_10] : memref<16x1xf32, #tpu.memory_space<vmem>>, vector<16x1xf32>
    %12 = vector.broadcast %11 : vector<16x1xf32> to vector<16x128xf32>
    %13 = arith.addf %10, %12 : vector<16x128xf32>
    %c0_11 = arith.constant 0 : index
    %c0_12 = arith.constant 0 : index
    %14 = vector.load %arg10[%c0_11, %c0_12] : memref<16x128xf32, #tpu.memory_space<vmem>>, vector<16x128xf32>
    tpu.vector_store %arg10[%c0_11, %c0_12], %13 {strides = array<i32>} : memref<16x128xf32, #tpu.memory_space<vmem>>, vector<16x128xf32>,
    %c0_13 = arith.constant 0 : index
    %c0_14 = arith.constant 0 : index
    %15 = vector.load %arg6[%c0_13, %c0_14] : memref<32x16xbf16, #tpu.memory_space<vmem>>, vector<32x16xbf16>
    %16 = arith.truncf %13 : vector<16x128xf32> to vector<16x128xbf16>
    %cst_15 = arith.constant dense<0.000000e+00> : vector<32x128xf32>
    %17 = tpu.matmul %15, %16, %cst_15 {dimension_numbers = #tpu.dot_dimension_numbers<[1], [0], [0], [1], [0, 0, 1, 1], [], []>} : vector<32x16xbf16>, vector<16x128xbf16>, vector<32x128xf32> -> vector<32x128xf32>
    %c0_16 = arith.constant 0 : index
    %c0_17 = arith.constant 0 : index
    %18 = vector.load %arg7[%c0_16, %c0_17] : memref<32x1xf32, #tpu.memory_space<vmem>>, vector<32x1xf32>
    %19 = vector.broadcast %18 : vector<32x1xf32> to vector<32x128xf32>
    %20 = arith.addf %17, %19 : vector<32x128xf32>
    %cst_18 = arith.constant 0.000000e+00 : f32
    %21 = vector.broadcast %cst_18 : f32 to vector<32x128xf32>
    %22 = arith.maximumf %20, %21 : vector<32x128xf32>
    %c0_19 = arith.constant 0 : index
    %c0_20 = arith.constant 0 : index
    %23 = vector.load %arg8[%c0_19, %c0_20] : memref<32x32xbf16, #tpu.memory_space<vmem>>, vector<32x32xbf16>
    %24 = arith.truncf %22 : vector<32x128xf32> to vector<32x128xbf16>
    %cst_21 = arith.constant dense<0.000000e+00> : vector<32x128xf32>
    %25 = tpu.matmul %23, %24, %cst_21 {dimension_numbers = #tpu.dot_dimension_numbers<[1], [0], [0], [1], [0, 0, 1, 1], [], []>} : vector<32x32xbf16>, vector<32x128xbf16>, vector<32x128xf32> -> vector<32x128xf32>
    %c0_22 = arith.constant 0 : index
    %c0_23 = arith.constant 0 : index
    %26 = vector.load %arg9[%c0_22, %c0_23] : memref<32x1xf32, #tpu.memory_space<vmem>>, vector<32x1xf32>
    %27 = vector.broadcast %26 : vector<32x1xf32> to vector<32x128xf32>
    %28 = arith.addf %25, %27 : vector<32x128xf32>
    %cst_24 = arith.constant 0.000000e+00 : f32
    %29 = vector.broadcast %cst_24 : f32 to vector<32x128xf32>
    %30 = arith.maximumf %28, %29 : vector<32x128xf32>
    %c0_25 = arith.constant 0 : index
    %c0_26 = arith.constant 0 : index
    %31 = vector.load %arg11[%c0_25, %c0_26] : memref<32x128xf32, #tpu.memory_space<vmem>>, vector<32x128xf32>
    tpu.vector_store %arg11[%c0_25, %c0_26], %30 {strides = array<i32>} : memref<32x128xf32, #tpu.memory_space<vmem>>, vector<32x128xf32>,
    return
  }
  func.func @transform_0(%arg0: i32) -> (i32, i32) {
    %c0_i32 = arith.constant 0 : i32
    %c0_i32_0 = arith.constant 0 : i32
    return %c0_i32, %arg0 : i32, i32
  }
  func.func @transform_1(%arg0: i32) -> (i32, i32) {
    %c0_i32 = arith.constant 0 : i32
    %c0_i32_0 = arith.constant 0 : i32
    %c0_i32_1 = arith.constant 0 : i32
    return %c0_i32, %c0_i32_0 : i32, i32
  }
  func.func @transform_2(%arg0: i32) -> (i32, i32) {
    %c0_i32 = arith.constant 0 : i32
    %c0_i32_0 = arith.constant 0 : i32
    %c0_i32_1 = arith.constant 0 : i32
    return %c0_i32, %c0_i32_0 : i32, i32
  }
  func.func @transform_3(%arg0: i32) -> (i32, i32) {
    %c0_i32 = arith.constant 0 : i32
    %c0_i32_0 = arith.constant 0 : i32
    %c0_i32_1 = arith.constant 0 : i32
    return %c0_i32, %c0_i32_0 : i32, i32
  }
  func.func @transform_4(%arg0: i32) -> (i32, i32) {
    %c0_i32 = arith.constant 0 : i32
    %c0_i32_0 = arith.constant 0 : i32
    %c0_i32_1 = arith.constant 0 : i32
    return %c0_i32, %c0_i32_0 : i32, i32
  }
  func.func @transform_5(%arg0: i32) -> (i32, i32) {
    %c0_i32 = arith.constant 0 : i32
    %c0_i32_0 = arith.constant 0 : i32
    %c0_i32_1 = arith.constant 0 : i32
    return %c0_i32, %c0_i32_0 : i32, i32
  }
  func.func @transform_6(%arg0: i32) -> (i32, i32) {
    %c0_i32 = arith.constant 0 : i32
    %c0_i32_0 = arith.constant 0 : i32
    %c0_i32_1 = arith.constant 0 : i32
    return %c0_i32, %c0_i32_0 : i32, i32
  }
  func.func @transform_7(%arg0: i32) -> (i32, i32) {
    %c0_i32 = arith.constant 0 : i32
    %c0_i32_0 = arith.constant 0 : i32
    %c0_i32_1 = arith.constant 0 : i32
    return %c0_i32, %c0_i32_0 : i32, i32
  }
  func.func @transform_8(%arg0: i32) -> (i32, i32) {
    %c0_i32 = arith.constant 0 : i32
    %c0_i32_0 = arith.constant 0 : i32
    %c0_i32_1 = arith.constant 0 : i32
    return %c0_i32, %c0_i32_0 : i32, i32
  }
  func.func @transform_9(%arg0: i32) -> (i32, i32) {
    %c0_i32 = arith.constant 0 : i32
    %c0_i32_0 = arith.constant 0 : i32
    return %c0_i32, %arg0 : i32, i32
  }
  func.func @transform_10(%arg0: i32) -> (i32, i32) {
    %c0_i32 = arith.constant 0 : i32
    %c0_i32_0 = arith.constant 0 : i32
    return %c0_i32, %arg0 : i32, i32
  }
}

</mosaic_0001>

<bundles_post_ra>
// kernel: _lambda_.1
= control target key start
LH: loop header
LB: loop body
LE: loop exit
PB: predicated region body
PF: predicated region fallthrough
CT: control target
= control target key end

     0   :  { %s1460_s0 = inlined_call_operand.vmem [shape: bf16[32,256], index: 0, kind: input, shape index: {}]   ;;  %s1461_s1 = inlined_call_operand.vmem [shape: bf16[32,32], index: 1, kind: input, shape index: {}]   ;;  %s1462_s2 = inlined_call_operand.vmem [shape: f32[32,1], index: 2, kind: input, shape index: {}]   ;;  %s1463_s3 = inlined_call_operand.vmem [shape: bf16[16,32], index: 3, kind: input, shape index: {}]   ;;  %s1464_s4 = inlined_call_operand.vmem [shape: f32[16,1], index: 4, kind: input, shape index: {}]   ;;  %s1465_s5 = inlined_call_operand.vmem [shape: bf16[32,16], index: 5, kind: input, shape index: {}]   ;;  %s1466_s6 = inlined_call_operand.vmem [shape: f32[32,1], index: 6, kind: input, shape index: {}]   ;;  %s1467_s7 = inlined_call_operand.vmem [shape: bf16[32,32], index: 7, kind: input, shape index: {}]   ;;  %s1468_s8 = inlined_call_operand.vmem [shape: f32[32,1], index: 8, kind: input, shape index: {}]   ;;  %s1469_s9 = inlined_call_operand.hbm [shape: f32[16,256], index: 9, kind: output, shape index: {0}]   ;;  %s1470_s10 = inlined_call_operand.hbm [shape: f32[32,256], index: 10, kind: output, shape index: {1}]  }
   0x1   :  { %1474 = sst [smem:[#allocation9_spill]] %s1460_s0 }
   0x2   :  { %16 = vsyncpa [#allocation4], 0 }
   0x3   :  { %18 = vsyncpa [#allocation4 + $0x1], 0 }
   0x4   :  { %19 = vsyncpa [#allocation6], 0 }
   0x5   :  { %21 = vsyncpa [#allocation6 + $0x1], 0  ;;  %s1232_s13 = smov 0   ;;  %s1234_s14 = smov 0  }
   0x6   :  { %s1236_s15 = smov 0   ;;  %s1238_s16 = smov 0  }
   0x7 LB: > { %s1471_s17 = sadd.s32 4294967295, %s1167_s16   ;;  %s941_s18 = sadd.s32 4294967294, %s1167_s16   ;;  %s1167_s16 = sphi %s1238_s16, %s1485_s16   ;;  %s1163_s15 = sphi %s1236_s15, %s1484_s15   ;;  %s1159_s14 = sphi %s1234_s14, %s1483_s14   ;;  %s1155_s13 = sphi %s1232_s13, %s1482_s13  }
   0x8   : > { %s1255_s19 = sadd.s32 1, %s1167_s16   ;;  %s34_s20 = sadd.s32 1, %s1163_s15 }
   0x9   : > { %s31_s21 = ssub.s32 %s1167_s16, %s1255_s19  ;;  %p41_p0 = scmp.ne.s32.totalorder %s1163_s15, %s1159_s14 }
   0xa   : > { %p32_p1 = scmp.eq.s32.totalorder %s31_s21, 0  ;;  %p42_p2 = scmp.eq.s32.totalorder %s1167_s16, 0 }
   0xb   : > { %p239_p3 = scmp.eq.s32.totalorder %s1471_s17, 1  ;;  %p244_p4 = scmp.ne.s32.totalorder %s1159_s14, %s1155_s13 }
   0xc   : > { %s1268_s22 = scalar_select %p32_p1, %s1163_s15, %s34_s20  }
   0xd   : > { %p43_p5 = por %p42_p2, %p41_p0  ;;  %p1270_p6 = por %p239_p3, %p41_p0 }
   0xe   : > { %p245_p7 = scmp.eq.s32.totalorder %s941_s18, 1  ;;  %p943_p9 = scmp.ge.s32.totalorder %s1167_s16, 2 }
  0x10   : > { %p1274_p8 = por %p245_p7, %p244_p4  ;;  %311 = sbr.rel (%p943_p9) target bundleno = 33 (0x21), region = 48 }
  0x15   : > { %314 = sbr.rel (!%p43_p5) target bundleno = 33 (0x21), region = 52  ;;  %s316_s25 = sand.u32 (%p43_p5), 1, %s1163_s15  }
  0x16   : > { %s945_s26 = sshll.u32 (%p43_p5), %s1167_s16, 2  ;;  %s944_s27 = sshll.u32 (%p43_p5), %s316_s25, 4 }
  0x17   : > { %s1477_s0 = sld [smem:[#allocation9_spill]] (%p43_p5)  ;;  %s318_s11 = scalar_lea.vmem (%p43_p5), [#allocation2], %s944_s27 }
  0x1d   : > { %s320_s30 = scalar_lea.vmem %s1477_s0, %s945_s26 }
  0x1e   : > { %v337_v0 = vld [vmem:[%s320_s30] sm:$0xf]  ;;  %v339_v1 = vld [vmem:[%s320_s30 + $0x8] sm:$0xf]  ;;  %v341_v2 = vld [vmem:[%s320_s30 + $0x10] sm:$0xf] }
  0x1f   : > { %338 = vst [vmem:[%s318_s11] sm:$0xf] %v337_v0  ;;  %340 = vst [vmem:[%s318_s11 + $0x4] sm:$0xf] %v339_v1  ;;  %v343_v3 = vld [vmem:[%s320_s30 + $0x18] sm:$0xf] }
  0x20   : > { %342 = vst [vmem:[%s318_s11 + $0x8] sm:$0xf] %v341_v2  ;;  %344 = vst [vmem:[%s318_s11 + $0xc] sm:$0xf] %v343_v3 }
  0x21 PF: > { %p946_p10 = scmp.ge.s32.totalorder %s1167_s16, 1  ;;  %p375_p11 = scmp.lt.s32.totalorder %s1167_s16, 3 }
  0x23   : > { %p376_p12 = pnand %p946_p10, %p375_p11 }
  0x24   : > { %s1289_s12 = sand.u32 (!%p376_p12), 1, %s1159_s14  }
  0x25   : > { %379 = sbr.rel (%p376_p12) target bundleno = 896 (0x380), region = 93  ;;  %s947_s21 = sshll.u32 (!%p376_p12), %s1289_s12, 4 }
  0x26   : > { %s384_s27 = scalar_lea.vmem (!%p376_p12), [#allocation2], %s947_s21  ;;  %s1354_s30 = scalar_lea.vmem (!%p376_p12), [#allocation3], %s947_s21 }
  0x27   : > { %s826_s26 = sshll.u32 (!%p376_p12), %s1354_s30, 4  ;;  %s1371_s26 = int_to_ptr.vmem [resolvable:$true] %s826_s26 }
  0x28   : > { %s1077_s21 = scalar_lea.vmem (!%p376_p12), %s1371_s26, 256 }
  0x29   : > { %p1078_p13 = scmp.ne.s32.totalorder (!%p376_p12), %s1371_s26, %s1077_s21 }
  0x2a   : > { %v1070_v4 = vld [vmem:[%s1461_s1] sm:$0xff]   ;;  %vm479_vm0 = vcmask 261120   ;;  %v435_v5 = vld [vmem:[%s1462_s2 + $0x10] sm:$0xff]  ;;  %v1068_v6 = vld [vmem:[%s384_s27 + $0x8] sm:$0xff]   ;;  %v1169_v7 = vmov 0   ;;  %v1170_v23 = vmov 0.0  }
  0x2b   : > { %990 = vmatprep.mubr.msk.bf16.mxu0 %vm479_vm0, %v1070_v4  ;;  %1066 = vset.pattern.permute.xlu0 %v1169_v7  ;;  %v1069_v8 = vld [vmem:[%s384_s27] sm:$0xff]   ;;  %v436_v9 = vld [vmem:[%s1462_s2 + $0x18] sm:$0xff]  ;;  %v434_v11 = vld [vmem:[%s1462_s2 + $0x8] sm:$0xff]  ;;  %vm1171_vm1 = vmmov 0   ;;  %vm645_vm2 = vcmask 130048   ;;  %s1478_s27 = sadd.s32 4294967295, %s1167_s16   ;;  %p1079_p0 = pnand %p1078_p13, %p1270_p6 }
  0x2c   : > { %1067 = vset.pattern.permute.xlu1 %v1169_v7  ;;  %449 = vperm.xlu0 %1066, %v435_v5   ;;  %v433_v10 = vld [vmem:[%s1462_s2] sm:$0xff]  ;;  %v1071_v12 = vld [vmem:[%s1461_s1 + $0x8] sm:$0xff]   ;;  %v613_v15 = vld [vmem:[%s1466_s6 + $0x10] sm:$0xff]  ;;  %s1375_s28 = sshll.u32 %s1478_s27, 7 }
  0x2d   : > { %986 = vmatprep.subr.bf16.mxu0 %v1068_v6  ;;  %439 = vperm.xlu1 %1067, %v433_v10   ;;  %v543_v13 = vld [vmem:[%s1464_s4] sm:$0xff]  ;;  %v544_v14 = vld [vmem:[%s1464_s4 + $0x8] sm:$0xff]  ;;  %v614_v16 = vld [vmem:[%s1466_s6 + $0x18] sm:$0xff]  ;;  %s1381_s18 = scalar_lea.hbm %s1469_s9, %s1375_s28  ;;  %p1080_p1 = pneg %p1079_p0 }
  0x2e   : > { %987 = vmatpush3.bf16.msra.mxu0 %v1068_v6  ;;  %v611_v17 = vld [vmem:[%s1466_s6] sm:$0xff]  ;;  %v612_v18 = vld [vmem:[%s1466_s6 + $0x8] sm:$0xff]  ;;  %v713_v21 = vld [vmem:[%s1468_s8 + $0x10] sm:$0xff]  ;;  %994 = vmatprep.subr.bf16.mxu1 %v1170_v23 }
  0x2f   : > { %988 = vmatprep.subr.bf16.mxu0 %v1069_v8  ;;  %v711_v19 = vld [vmem:[%s1468_s8] sm:$0xff]  ;;  %v712_v20 = vld [vmem:[%s1468_s8 + $0x8] sm:$0xff]  ;;  %v714_v22 = vld [vmem:[%s1468_s8 + $0x18] sm:$0xff]  ;;  %998 = vmatprep.mubr.msk.bf16.mxu1 %vm1171_vm1, %v1170_v23 }
  0x30   : > { %454 = vperm.xlu0 %1066, %v436_v9   ;;  %v1072_v42 = vld [vmem:[%s1463_s3] sm:$0xff]   ;;  %v1074_v53 = vld [vmem:[%s1465_s5 + $0x8] sm:$0xff]  }
  0x31   : > { %444 = vperm.xlu1 %1067, %v434_v11   ;;  %v1073_v43 = vld [vmem:[%s1465_s5] sm:$0xff]   ;;  %v1076_v9 = vld [vmem:[%s1467_s7 + $0x8] sm:$0xff]  }
  0x32   : > { %989 = vmatpush3.bf16.msra.mxu0 %v1069_v8  ;;  %v1075_v54 = vld [vmem:[%s1467_s7] sm:$0xff]  }
  0x34   : > { %547 = vperm.xlu0 %1066, %v543_v13  }
  0x35   : > { %991 = vmatmul.mubr.msk.bf16.vlgmr.msra.gmra.mxu0 %vm479_vm0, %v1071_v12  ;;  %552 = vperm.xlu1 %1067, %v544_v14  }
  0x36   : > { %1004 = vmatprep.mubr.msk.bf16.mxu0 %vm645_vm2, %v1073_v43 }
  0x38   : > { %627 = vperm.xlu0 %1066, %v613_v15  }
  0x39   : > { %632 = vperm.xlu1 %1067, %v614_v16  }
  0x3c   : > { %617 = vperm.xlu0 %1066, %v611_v17  }
  0x3d   : > { %622 = vperm.xlu1 %1067, %v612_v18  }
  0x40   : > { %717 = vperm.xlu0 %1066, %v711_v19  }
  0x41   : > { %722 = vperm.xlu1 %1067, %v712_v20  }
  0x44   : > { %727 = vperm.xlu0 %1066, %v713_v21  }
  0x45   : > { %732 = vperm.xlu1 %1067, %v714_v22  }
  0xa7   : > { %v450_v24 = vpop.permute.xlu0 %449 }
  0xa8   : > { %v440_v25 = vpop.permute.xlu1 %439 }
  0xab   : > { %v455_v29 = vpop.permute.xlu0 %454 }
  0xac   : > { %v445_v32 = vpop.permute.xlu1 %444 }
  0xaf   : > { %v548_v44 = vpop.permute.xlu0 %547 }
  0xb0   : > { %v553_v48 = vpop.permute.xlu1 %552 }
  0xb3   : > { %v628_v55 = vpop.permute.xlu0 %627 }
  0xb4   : > { %v633_v56 = vpop.permute.xlu1 %632 }
  0xb7   : > { %v618_v60 = vpop.permute.xlu0 %617 }
  0xb8   : > { %v623_v0 = vpop.permute.xlu1 %622 }
  0xf5   : > { %v992_v26 = vpop.f32.mrf.mxu0 }
  0xf6   : > { %v529_v28 = vadd.f32 %v992_v26, %v450_v24 }
  0xf7   : > { %v520_v27 = vpop.f32.mrf.mxu0 }
  0xf8   : > { %v537_v34 = vmax.f32 %v529_v28, 0.0  ;;  %v521_v35 = vadd.f32 %v520_v27, %v440_v25 }
  0xf9   : > { %v993_v30 = vpop.f32.mrf.mxu0 }
  0xfa   : > { %v532_v31 = vadd.f32 %v993_v30, %v455_v29  ;;  %v535_v40 = vmax.f32 %v521_v35, 0.0 }
  0xfb   : > { %v523_v33 = vpop.f32.mrf.mxu0 }
  0xfc   : > { %v538_v36 = vmax.f32 %v532_v31, 0.0  ;;  %v524_v37 = vadd.f32 %v523_v33, %v445_v32 }
  0xfe   : > { %v536_v38 = vmax.f32 %v524_v37, 0.0  ;;  %v542_v39 = vpack.c.bf16 %v538_v36, %v537_v34 }
 0x100   : > { %995 = vmatpush3.bf16.msra.mxu1 %v542_v39  ;;  %v541_v41 = vpack.c.bf16 %v536_v38, %v535_v40 }
 0x101   : > { %996 = vmatprep.subr.bf16.mxu1 %v1170_v23 }
 0x104   : > { %997 = vmatpush3.bf16.msra.mxu1 %v541_v41 }
 0x107   : > { %999 = vmatmul.mubr.msk.bf16.vlgmr.msra.gmra.mxu1 %vm479_vm0, %v1072_v42 }
 0x108   : > { %1012 = vmatprep.mubr.msk.bf16.mxu1 %vm479_vm0, %v1075_v54 }
 0x1c7   : > { %v597_v45 = vpop.f32.mrf.mxu1 }
 0x1c8   : > { %v598_v46 = vadd.f32 %v597_v45, %v548_v44 }
 0x1c9   : > { %v1000_v47 = vpop.f32.mrf.mxu1 }
 0x1ca   : > { %604 = vst [vmem:[%s1354_s30] sm:$0xff] %v598_v46 }
 0x1cb   : > { %v600_v49 = vpop.f32.mrf.mxu1 }
 0x1cc   : > { %v601_v50 = vadd.f32 %v600_v49, %v553_v48 }
 0x1cd   : > { %v1001_v51 = vpop.f32.mrf.mxu1 }
 0x1ce   : > { %605 = vst [vmem:[%s1354_s30 + $0x8] sm:$0xff] %v601_v50  ;;  %v610_v52 = vpack.c.bf16 %v601_v50, %v598_v46  ;;  %s1172_s30 = smov [#allocation3]  }
 0x1cf   : > { %s1081_s17 = sshll.u32 %s1172_s30, 4  ;;  %s1082_s17 = int_to_ptr.vmem [resolvable:$false] %s1081_s17 }
 0x1d0   : > { %1002 = vmatprep.subr.bf16.mxu0 %v610_v52  ;;  %s1083_s25 = scalar_lea.vmem %s1082_s17, 512  ;;  %p1084_p2 = scmp.lt.s32.totalorder %s1371_s26, %s1082_s17 }
 0x1d1   : > { %1003 = vmatpush3.bf16.msra.mxu0 %v610_v52  ;;  %p1085_p3 = scmp.lt.s32.totalorder %s1083_s25, %s1077_s21 }
 0x1d3   : > { %p1086_p4 = por %p1085_p3, %p1084_p2 }
 0x1d4   : > { %1005 = vmatmul.mubr.msk.bf16.vlgmr.msra.gmra.mxu0 %vm645_vm2, %v1074_v53 }
 0x1d5   : > { %p1087_p5 = pnand %p1086_p4, %p1080_p1 }
 0x294   : > { %v1006_v57 = vpop.f32.mrf.mxu0 }
 0x295   : > { %v695_v59 = vadd.f32 %v1006_v57, %v628_v55 }
 0x296   : > { %v686_v58 = vpop.f32.mrf.mxu0 }
 0x297   : > { %v687_v62 = vadd.f32 %v686_v58, %v618_v60  ;;  %v703_v2 = vmax.f32 %v695_v59, 0.0 }
 0x298   : > { %v1007_v61 = vpop.f32.mrf.mxu0 }
 0x299   : > { %v698_v63 = vadd.f32 %v1007_v61, %v633_v56  ;;  %v701_v5 = vmax.f32 %v687_v62, 0.0 }
 0x29a   : > { %v689_v1 = vpop.f32.mrf.mxu0 }
 0x29b   : > { %v704_v3 = vmax.f32 %v698_v63, 0.0  ;;  %v690_v4 = vadd.f32 %v689_v1, %v623_v0 }
 0x29d   : > { %v710_v6 = vpack.c.bf16 %v704_v3, %v703_v2  ;;  %v702_v7 = vmax.f32 %v690_v4, 0.0 }
 0x29f   : > { %v709_v8 = vpack.c.bf16 %v702_v7, %v701_v5  ;;  %1008 = vmatprep.subr.bf16.mxu1 %v710_v6 }
 0x2a0   : > { %1009 = vmatpush3.bf16.msra.mxu1 %v710_v6 }
 0x2a1   : > { %1010 = vmatprep.subr.bf16.mxu1 %v709_v8 }
 0x2a4   : > { %1011 = vmatpush3.bf16.msra.mxu1 %v709_v8 }
 0x2a7   : > { %1013 = vmatmul.mubr.msk.bf16.vlgmr.msra.gmra.mxu1 %vm479_vm0, %v1076_v9 }
 0x2a8   : > { %1090 = shalt.err (!%p1087_p5)
}
 0x2a9   : > { %s1091_s27 = scalar_lea.hbm %s1381_s18, 256  ;;  %s1095_s30 = scalar_lea.hbm %s1469_s9, 512 }
 0x2aa   : > { %p1092_p7 = scmp.ne.s32.totalorder %s1381_s18, %s1091_s27  ;;  %p1096_p12 = scmp.lt.s32.totalorder %s1381_s18, %s1469_s9 }
 0x2ab   : > { %p1097_p13 = scmp.lt.s32.totalorder %s1095_s30, %s1091_s27 }
 0x2ac   : > { %p1093_p10 = pnand %p1092_p7, %p1270_p6 }
 0x2ad   : > { %p1098_p0 = por %p1097_p13, %p1096_p12 }
 0x2ae   : > { %p1094_p11 = pneg %p1093_p10 }
 0x2b0   : > { %p1099_p1 = pnand %p1098_p0, %p1094_p11 }
 0x2b2   : > { %1102 = shalt.err (!%p1099_p1)
}
 0x2b3   : > { %s1472_s21 = smov 128   ;;  %s1473_s17 = smov 256   ;;  %v718_v10 = vpop.permute.xlu0 %717  ;;  %v723_v11 = vpop.permute.xlu1 %722 }
 0x2b4   : > { %s1175_s25 = smov 8   ;;  %s1479_s29 = scalar_lea.sflag [#allocation4], %s1289_s12 }
 0x2b5   : > { %1016 = dma.vmem_to_hbm [thread:$0]  (%p1270_p6), %s1371_s26, 256, %s1381_s18, %s1479_s29, %s1472_s21, %s1473_s17, %s1175_s25  }
 0x2b6   : > { %s949_s0 = sshll.u32 %s1289_s12, 5  ;;  %s1416_s11 = scalar_lea.hbm %s1470_s10, %s1375_s28 }
 0x2b7   : > { %v728_v12 = vpop.permute.xlu0 %727  ;;  %v733_v18 = vpop.permute.xlu1 %732  ;;  %s423_s20 = scalar_lea.vmem [#allocation5], %s949_s0  ;;  %s814_s30 = scalar_lea.sflag [#allocation6], %s1289_s12 }
 0x2b8   : > { %s841_s27 = sshll.u32 %s423_s20, 4  ;;  %s1176_s0 = smov [#allocation5]   ;;  %s1410_s27 = int_to_ptr.vmem [resolvable:$true] %s841_s27 }
 0x2b9   : > { %s1103_s29 = scalar_lea.vmem %s1410_s27, 512  ;;  %s1107_s21 = sshll.u32 %s1176_s0, 4  ;;  %s1108_s21 = int_to_ptr.vmem [resolvable:$false] %s1107_s21 }
 0x2ba   : > { %p1104_p2 = scmp.ne.s32.totalorder %s1410_s27, %s1103_s29  ;;  %s1109_s17 = scalar_lea.vmem %s1108_s21, 1024 }
 0x2bb   : > { %p1110_p5 = scmp.lt.s32.totalorder %s1410_s27, %s1108_s21  ;;  %p1111_p7 = scmp.lt.s32.totalorder %s1109_s17, %s1103_s29 }
 0x2bc   : > { %p1105_p3 = pnand %p1104_p2, %p1270_p6 }
 0x2bd   : > { %p1112_p10 = por %p1111_p7, %p1110_p5 }
 0x2be   : > { %p1106_p4 = pneg %p1105_p3 }
 0x2c0   : > { %p1113_p11 = pnand %p1112_p10, %p1106_p4 }
 0x367   : > { %v1014_v13 = vpop.f32.mrf.mxu1 }
 0x368   : > { %v794_v14 = vadd.f32 %v1014_v13, %v728_v12 }
 0x369   : > { %v785_v15 = vpop.f32.mrf.mxu1 }
 0x36a   : > { %v802_v16 = vmax.f32 %v794_v14, 0.0  ;;  %v786_v17 = vadd.f32 %v785_v15, %v718_v10 }
 0x36b   : > { %v1015_v19 = vpop.f32.mrf.mxu1 }
 0x36c   : > { %806 = vst [vmem:[%s423_s20 + $0x10] sm:$0xff] %v802_v16  ;;  %v800_v20 = vmax.f32 %v786_v17, 0.0  ;;  %v797_v21 = vadd.f32 %v1015_v19, %v733_v18 }
 0x36d   : > { %v788_v22 = vpop.f32.mrf.mxu1 }
 0x36e   : > { %804 = vst [vmem:[%s423_s20] sm:$0xff] %v800_v20  ;;  %v803_v23 = vmax.f32 %v797_v21, 0.0  ;;  %v789_v24 = vadd.f32 %v788_v22, %v723_v11 }
 0x370   : > { %807 = vst [vmem:[%s423_s20 + $0x18] sm:$0xff] %v803_v23  ;;  %v801_v25 = vmax.f32 %v789_v24, 0.0 }
 0x372   : > { %805 = vst [vmem:[%s423_s20 + $0x8] sm:$0xff] %v801_v25 }
 0x373   : > { %1116 = shalt.err (!%p1113_p11)
}
 0x374   : > { %s1117_s28 = scalar_lea.hbm %s1416_s11, 512  ;;  %s1121_s26 = scalar_lea.hbm %s1470_s10, 1024 }
 0x375   : > { %p1118_p12 = scmp.ne.s32.totalorder %s1416_s11, %s1117_s28  ;;  %p1122_p1 = scmp.lt.s32.totalorder %s1416_s11, %s1470_s10 }
 0x376   : > { %p1123_p2 = scmp.lt.s32.totalorder %s1121_s26, %s1117_s28 }
 0x377   : > { %p1119_p13 = pnand %p1118_p12, %p1270_p6 }
 0x378   : > { %p1124_p3 = por %p1123_p2, %p1122_p1 }
 0x379   : > { %p1120_p0 = pneg %p1119_p13 }
 0x37b   : > { %p1125_p4 = pnand %p1124_p3, %p1120_p0 }
 0x37d   : > { %1128 = shalt.err (!%p1125_p4)
}
 0x37e   : > { %s1480_s21 = smov 256   ;;  %s1481_s17 = smov 128  }
 0x37f   : > { %1017 = dma.vmem_to_hbm [thread:$0]  (%p1270_p6), %s1410_s27, 512, %s1416_s11, %s814_s30, %s1481_s17, %s1480_s21, %s1175_s25  }
 0x380 PF: > { %s856_s29 = sand.u32 1, %s1155_s13   ;;  %p1021_p5 = pnand %p943_p9, %p1274_p8 }
 0x381   : > { %s857_s28 = scalar_lea.sflag [#allocation4], %s856_s29 }
 0x382   : > { %p1022_p7 = pneg %p1021_p5 }
 0x384   : > { %1146 = dma.done.wait (%p1022_p7), %s857_s28, 256  }
 0x385   : > { %1148 = vsyncadd (%p1022_p7), %s857_s28, 4294967040  ;;  %s866_s12 = scalar_lea.sflag [#allocation6], %s856_s29 }
 0x386   : > { %1150 = dma.done.wait (%p1022_p7), %s866_s12, 512  }
 0x387   : > { %1152 = vsyncadd (%p1022_p7), %s866_s12, 4294966784  ;;  %p24_p6 = scmp.ge.s32.totalorder %s1255_s19, 4   ;;  %s1482_s13 = smov %s1159_s14 }
 0x388   : > { %s1483_s14 = smov %s1163_s15  ;;  %s1484_s15 = smov %s1268_s22 }
 0x389   : > { %s1485_s16 = smov %s1255_s19  ;;  %26 = sbr.rel (!%p24_p6) target bundleno = 7 (0x7), region = 154 }
 0x38e   :  { %871 = vsyncpa [#allocation4], 1 }
 0x38f   :  { %873 = vsyncpa [#allocation4 + $0x1], 1 }
 0x390   :  { %874 = vsyncpa [#allocation6], 1 }
 0x391   :  { %876 = vsyncpa [#allocation6 + $0x1], 1 }

</bundles_post_ra>
